<compile_context>
chip_gen: v7x
topology: tpu7x:2x2x1
jax: 0.10.0
libtpu: 0.0.40
codegen_flags: <defaults>
</compile_context>

<pallas_src>
import functools

import jax
import jax.numpy as jnp
from jax.experimental import pallas as pl
from jax.experimental.pallas import tpu as pltpu

LANE = 128             # TPU lane width
SUBLANE = 8            # TPU sublane width (f32)
MAX_BLOCK_B = 1024     # max batch rows per tile (VMEM-safe on all generations)
MIN_BLOCK_B = 256      # below this, per-grid-step overhead (~0.35 us) dominates
TARGET_TILES = 4       # >=4 tiles -> both v7x TCs get work AND double-buffer


def _linear_kernel(x_ref, wt_ref, b_ref, o_ref):
    # x_ref : (TB, D)  VMEM tile  (one batch slab, streamed per grid step)
    # wt_ref: (D, Kp)  VMEM tile  (resident across all grid steps, bf16)
    # b_ref : (1, Kp)  VMEM tile  (resident across all grid steps, f32)
    # o_ref : (TB, k)  VMEM tile  (narrow masked store; k == true class count)
    k = o_ref.shape[-1]
    acc = jnp.dot(x_ref[...], wt_ref[...], preferred_element_type=jnp.float32)
    logits = acc + b_ref[...]                 # (TB, Kp), f32
    o_ref[...] = logits[:, :k].astype(o_ref.dtype)


def prepare_params(w, b, *, weight_dtype=jnp.bfloat16):
    """One-time parameter prep (do NOT call per forward).

    w: (K, D), b: (K,)
    Returns (wt (D, Kp) weight_dtype, b2 (1, Kp) f32, K) with Kp = round_up(K, 128).

    weight_dtype=bf16 is numerically free on TPU: default-precision matmul
    already truncates MXU operands to bf16 (f32 accumulate).  Pass
    jnp.float32 only if you also raise the matmul precision (3-6x MXU cost,
    matters on v5e).
    """
    K, D = w.shape
    Kp = max(LANE, ((K + LANE - 1) // LANE) * LANE)
    wt = jnp.zeros((D, Kp), dtype=weight_dtype).at[:, :K].set(
        w.T.astype(weight_dtype))
    b2 = jnp.zeros((1, Kp), dtype=jnp.float32).at[0, :K].set(
        b.astype(jnp.float32))
    return wt, b2, K


def _choose_tile_b(B):
    """Pick the batch tile size (rows per grid step)."""
    if B <= MIN_BLOCK_B:
        return B                      # single block; too small to split usefully
    tb = max(MIN_BLOCK_B, min(MAX_BLOCK_B, pl.cdiv(B, TARGET_TILES)))
    tb = ((tb + SUBLANE - 1) // SUBLANE) * SUBLANE   # sublane-aligned tiles
    return min(tb, B)


@functools.partial(jax.jit, static_argnames=("k",))
def multinomial_logistic_regression(x, wt, b2, *, k):
    """Forward pass: x @ W^T + b  -> (B, k) logits in x.dtype.

    x  : (B, D) float32 or bfloat16 (bf16 halves the dominant HBM read)
    wt : (D, Kp) pre-transposed padded weights (from prepare_params)
    b2 : (1, Kp) float32 bias (from prepare_params)
    """
    B, D = x.shape
    Kp = wt.shape[1]
    assert wt.shape[0] == D and b2.shape == (1, Kp) and k <= Kp

    tb = _choose_tile_b(B)
    grid = (pl.cdiv(B, tb),)

    bytes_accessed = (
        B * D * x.dtype.itemsize          # x read (dominant)
        + D * Kp * wt.dtype.itemsize      # weights read once (VMEM-resident)
        + Kp * b2.dtype.itemsize          # bias read
        + B * k * x.dtype.itemsize        # logits write
    )

    return pl.pallas_call(
        _linear_kernel,
        out_shape=jax.ShapeDtypeStruct((B, k), x.dtype),
        grid_spec=pl.GridSpec(
            grid=grid,
            in_specs=[
                pl.BlockSpec((tb, D), lambda i: (i, 0)),   # x: streamed per tile
                pl.BlockSpec((D, Kp), lambda i: (0, 0)),   # W^T: VMEM-resident
                pl.BlockSpec((1, Kp), lambda i: (0, 0)),   # bias: VMEM-resident
            ],
            out_specs=pl.BlockSpec((tb, k), lambda i: (i, 0)),
        ),
        compiler_params=pltpu.CompilerParams(
            # Independent batch tiles -> shard across TensorCores on v7x.
            dimension_semantics=("parallel",),
        ),
        cost_estimate=pl.CostEstimate(
            flops=2 * B * D * Kp,
            bytes_accessed=bytes_accessed,
            transcendentals=0,
        ),
    )(x, wt, b2)


if __name__ == "__main__":
    input_size = 784   # MNIST flattened image
    k = 10             # MNIST classes

    key = jax.random.PRNGKey(0)
    kx, kw, kb, kx2, kx3 = jax.random.split(key, 5)

    # Deterministic synthetic parameters (shapes match nn.Linear(784, 10)).
    bound = 1.0 / (input_size ** 0.5)
    w = jax.random.uniform(kw, (k, input_size), dtype=jnp.float32,
                           minval=-bound, maxval=bound)
    b = jax.random.uniform(kb, (k,), dtype=jnp.float32,
                           minval=-bound, maxval=bound)

    # One-time parameter prep (outside the per-step forward).
    wt, b2, _ = prepare_params(w, b)

    def ref_fn(xf):
        return xf.astype(jnp.float32) @ w.T + b

    # 1) Small batch: single-block path (grid=(1,)), f32 x.
    x = jax.random.normal(kx, (8, input_size), dtype=jnp.float32)
    out = jax.block_until_ready(multinomial_logistic_regression(x, wt, b2, k=k))
    assert out.shape == (8, k) and out.dtype == jnp.float32
    assert jnp.allclose(out, ref_fn(x), atol=2e-2, rtol=2e-2), \
        "mismatch (small batch)"

    # 2) Tiled path: B=1200 -> tb=304, grid=(4,), partial last tile (masked store).
    x_big = jax.random.normal(kx2, (1200, input_size), dtype=jnp.float32)
    out_big = jax.block_until_ready(
        multinomial_logistic_regression(x_big, wt, b2, k=k))
    assert out_big.shape == (1200, k)
    assert jnp.allclose(out_big, ref_fn(x_big), atol=2e-2, rtol=2e-2), \
        "mismatch (tiled batch)"

    # 3) bf16-streamed x (halves the dominant HBM read; f32 accumulation).
    x_bf16 = jax.random.normal(kx3, (512, input_size),
                               dtype=jnp.float32).astype(jnp.bfloat16)
    out_bf16 = jax.block_until_ready(
        multinomial_logistic_regression(x_bf16, wt, b2, k=k))
    assert out_bf16.shape == (512, k) and out_bf16.dtype == jnp.bfloat16
    assert jnp.allclose(out_bf16.astype(jnp.float32), ref_fn(x_bf16),
                        atol=5e-2, rtol=5e-2), "mismatch (bf16 batch)"

    print("KERNEL_OK")
</pallas_src>

<mosaic_0001>
module attributes {stable_mosaic.version = 11 : i64} {
  func.func @_linear_kernel(%arg0: i32, %arg1: memref<8x784xf32, #tpu.memory_space<vmem>>, %arg2: memref<784x128xbf16, #tpu.memory_space<vmem>>, %arg3: memref<1x128xf32, #tpu.memory_space<vmem>>, %arg4: memref<8x10xf32, #tpu.memory_space<vmem>>) attributes {dimension_semantics = [#tpu.dimension_semantics<parallel>], iteration_bounds = array<i64: 1>, scalar_prefetch = 0 : i64, scratch_operands = 0 : i64, tpu.core_type = #tpu.core_type<tc>, window_params = [{transform_indices = @transform_0, window_bounds = array<i64: 8, 784>}, {pipeline_mode = #tpu.pipeline_mode<synchronous>, transform_indices = @transform_1, window_bounds = array<i64: 784, 128>}, {pipeline_mode = #tpu.pipeline_mode<synchronous>, transform_indices = @transform_2, window_bounds = array<i64: 1, 128>}, {transform_indices = @transform_3, window_bounds = array<i64: 8, 10>}]} {
    %c0 = arith.constant 0 : index
    %c0_0 = arith.constant 0 : index
    %0 = vector.load %arg1[%c0, %c0_0] : memref<8x784xf32, #tpu.memory_space<vmem>>, vector<8x784xf32>
    %c0_1 = arith.constant 0 : index
    %c0_2 = arith.constant 0 : index
    %1 = vector.load %arg2[%c0_1, %c0_2] : memref<784x128xbf16, #tpu.memory_space<vmem>>, vector<784x128xbf16>
    %cst = arith.constant dense<0.000000e+00> : vector<8x128xf32>
    %2 = tpu.matmul %0, %1, %cst {dimension_numbers = #tpu.dot_dimension_numbers<[1], [0], [0], [1], [0, 0, 1, 1], [], []>} : vector<8x784xf32>, vector<784x128xbf16>, vector<8x128xf32> -> vector<8x128xf32>
    %c0_3 = arith.constant 0 : index
    %c0_4 = arith.constant 0 : index
    %3 = vector.load %arg3[%c0_3, %c0_4] : memref<1x128xf32, #tpu.memory_space<vmem>>, vector<1x128xf32>
    %4 = vector.broadcast %3 : vector<1x128xf32> to vector<8x128xf32>
    %5 = arith.addf %2, %4 : vector<8x128xf32>
    %6 = vector.extract_strided_slice %5 {offsets = [0, 0], sizes = [8, 10], strides = [1, 1]} : vector<8x128xf32> to vector<8x10xf32>
    %c0_5 = arith.constant 0 : index
    %c0_6 = arith.constant 0 : index
    %7 = vector.load %arg4[%c0_5, %c0_6] : memref<8x10xf32, #tpu.memory_space<vmem>>, vector<8x10xf32>
    tpu.vector_store %arg4[%c0_5, %c0_6], %6 {strides = array<i32>} : memref<8x10xf32, #tpu.memory_space<vmem>>, vector<8x10xf32>,
    return
  }
  func.func @transform_0(%arg0: i32) -> (i32, i32) {
    %c0_i32 = arith.constant 0 : i32
    %c0_i32_0 = arith.constant 0 : i32
    return %arg0, %c0_i32 : i32, i32
  }
  func.func @transform_1(%arg0: i32) -> (i32, i32) {
    %c0_i32 = arith.constant 0 : i32
    %c0_i32_0 = arith.constant 0 : i32
    %c0_i32_1 = arith.constant 0 : i32
    return %c0_i32, %c0_i32_0 : i32, i32
  }
  func.func @transform_2(%arg0: i32) -> (i32, i32) {
    %c0_i32 = arith.constant 0 : i32
    %c0_i32_0 = arith.constant 0 : i32
    %c0_i32_1 = arith.constant 0 : i32
    return %c0_i32, %c0_i32_0 : i32, i32
  }
  func.func @transform_3(%arg0: i32) -> (i32, i32) {
    %c0_i32 = arith.constant 0 : i32
    %c0_i32_0 = arith.constant 0 : i32
    return %arg0, %c0_i32 : i32, i32
  }
}

</mosaic_0001>

<bundles_post_ra>
// kernel: multinomial_logistic_regression.1
= control target key start
LH: loop header
LB: loop body
LE: loop exit
PB: predicated region body
PF: predicated region fallthrough
CT: control target
= control target key end

     0   :  { %8 = vsyncpa [#allocation3], 0  ;;  %s938_s0 = inlined_call_operand.hbm [shape: f32[8,784], index: 0, kind: input, shape index: {}]   ;;  %s939_s1 = inlined_call_operand.hbm [shape: bf16[784,128], index: 1, kind: input, shape index: {}]   ;;  %s940_s2 = inlined_call_operand.vmem [shape: f32[1,128], index: 2, kind: input, shape index: {}]   ;;  %s941_s3 = inlined_call_operand.hbm [shape: f32[8,10], index: 3, kind: output, shape index: {}]  }
   0x1   :  { %9 = vsyncpa [#allocation6], 0 }
   0x2   :  { %10 = vsyncpa [#allocation4], 0  ;;  %s865_s12 = smov [#allocation2]   ;;  %s866_s14 = smov [#allocation5]  }
   0x3   :  { %s17_s13 = sshll.u32 %s865_s12, 4  ;;  %s26_s15 = sshll.u32 %s866_s14, 4  ;;  %s18_s13 = int_to_ptr.vmem [resolvable:$true] %s17_s13  ;;  %s892_s15 = int_to_ptr.vmem [resolvable:$true] %s26_s15 }
   0x4   :  { %s793_s18 = scalar_lea.hbm %s938_s0, 896 }
   0x5   :  { %p794_p0 = scmp.ne.s32.totalorder %s938_s0, %s793_s18  ;;  %p797_p1 = scmp.lt.u32.totalorder %s793_s18, %s938_s0 }
   0x7   :  { %p799_p2 = pnand %p797_p1, %p794_p0 }
   0x9   :  { %802 = shalt.err (!%p799_p2)
}
   0xa   :  { %s803_s23 = scalar_lea.vmem %s18_s13, 896  ;;  %p808_p4 = scmp.lt.s32.totalorder %s18_s13, %s18_s13 }
   0xb   :  { %p804_p3 = scmp.ne.s32.totalorder %s18_s13, %s803_s23  ;;  %p809_p5 = scmp.lt.s32.totalorder %s803_s23, %s803_s23 }
   0xd   :  { %p810_p6 = por %p809_p5, %p808_p4 }
   0xf   :  { %p811_p7 = pnand %p810_p6, %p804_p3 }
  0x11   :  { %814 = shalt.err (!%p811_p7)
}
  0x12   :  { %20 = dma.hbm_to_vmem [thread:$0]  %s938_s0, 896, %s18_s13, [#allocation3]  }
  0x13   :  { %s815_s28 = scalar_lea.hbm %s939_s1, 6272 }
  0x14   :  { %p816_p8 = scmp.ne.s32.totalorder %s939_s1, %s815_s28  ;;  %p819_p9 = scmp.lt.u32.totalorder %s815_s28, %s939_s1 }
  0x16   :  { %p821_p10 = pnand %p819_p9, %p816_p8 }
  0x18   :  { %824 = shalt.err (!%p821_p10)
}
  0x19   :  { %s825_s6 = scalar_lea.vmem %s892_s15, 6272  ;;  %p830_p12 = scmp.lt.s32.totalorder %s892_s15, %s892_s15 }
  0x1a   :  { %p826_p11 = scmp.ne.s32.totalorder %s892_s15, %s825_s6  ;;  %p831_p13 = scmp.lt.s32.totalorder %s825_s6, %s825_s6 }
  0x1c   :  { %p832_p0 = por %p831_p13, %p830_p12 }
  0x1e   :  { %p833_p1 = pnand %p832_p0, %p826_p11 }
  0x20   :  { %836 = shalt.err (!%p833_p1)
}
  0x21   :  { %s867_s0 = smov 64   ;;  %s868_s7 = smov 4  }
  0x22   :  { %32 = dma.hbm_to_vmem [thread:$0]  %s939_s1, 6272, %s892_s15, [#allocation6], %s867_s0, %s867_s0, %s868_s7  }
  0x23   :  { %859 = dma.done.wait [#allocation3], 896  }
  0x24   :  { %860 = vsyncadd [#allocation3], 4294966400 }
  0x25   :  { %861 = dma.done.wait [#allocation6], 6272  }
  0x26   :  { %862 = vsyncadd [#allocation6], 4294961024  ;;  %v744_v0 = vld [vmem:[#allocation5 + $0x40] sm:$0xff]   ;;  %v748_v4 = vld [vmem:[#allocation5 + $0x48] sm:$0xff]   ;;  %v869_v39 = vmov 0.0   ;;  %vm870_vm0 = vmmov 0  }
  0x27   :  { %v745_v1 = vld [vmem:[#allocation5] sm:$0xff]   ;;  %673 = vmatprep.subr.bf16.mxu0 %v744_v0  ;;  %v749_v5 = vld [vmem:[#allocation5 + $0x8] sm:$0xff]   ;;  %v752_v8 = vld [vmem:[#allocation5 + $0x50] sm:$0xff]   ;;  %vm448_vm1 = vcmask 130048   ;;  %s871_s11 = smov [#allocation7]   ;;  %vm604_vm2 = vcmask 80896  }
  0x28   :  { %v746_v2 = vld [vmem:[#allocation5 + $0xc0] sm:$0xff]   ;;  %674 = vmatpush3.bf16.msra.mxu0 %v745_v1  ;;  %v750_v6 = vld [vmem:[#allocation5 + $0xc8] sm:$0xff]   ;;  %v753_v9 = vld [vmem:[#allocation5 + $0x10] sm:$0xff]   ;;  %s612_s12 = sshll.u32 %s871_s11, 4  ;;  %s613_s12 = int_to_ptr.vmem [resolvable:$true] %s612_s12 }
  0x29   :  { %v747_v3 = vld [vmem:[#allocation5 + $0x80] sm:$0xff]   ;;  %692 = vmatprep.subr.bf16.mxu1 %v746_v2  ;;  %675 = vmatprep.subr.bf16.mxu0 %v748_v4  ;;  %v751_v7 = vld [vmem:[#allocation5 + $0x88] sm:$0xff]   ;;  %v754_v10 = vld [vmem:[#allocation5 + $0xd0] sm:$0xff]   ;;  %p842_p3 = scmp.lt.s32.totalorder %s613_s12, %s613_s12 }
  0x2a   :  { %693 = vmatpush3.bf16.msra.mxu1 %v747_v3  ;;  %v755_v11 = vld [vmem:[#allocation5 + $0x90] sm:$0xff]   ;;  %v756_v12 = vld [vmem:[#allocation5 + $0x58] sm:$0xff]   ;;  %v760_v16 = vld [vmem:[#allocation5 + $0x60] sm:$0xff]  }
  0x2b   :  { %694 = vmatprep.subr.bf16.mxu1 %v750_v6  ;;  %v757_v13 = vld [vmem:[#allocation5 + $0x18] sm:$0xff]   ;;  %v761_v17 = vld [vmem:[#allocation5 + $0x20] sm:$0xff]   ;;  %v764_v20 = vld [vmem:[#allocation5 + $0x68] sm:$0xff]  }
  0x2c   :  { %676 = vmatpush3.bf16.msra.mxu0 %v749_v5  ;;  %v758_v14 = vld [vmem:[#allocation5 + $0xd8] sm:$0xff]   ;;  %v762_v18 = vld [vmem:[#allocation5 + $0xe0] sm:$0xff]   ;;  %v765_v21 = vld [vmem:[#allocation5 + $0x28] sm:$0xff]  }
  0x2d   :  { %677 = vmatprep.subr.bf16.mxu0 %v752_v8  ;;  %v759_v15 = vld [vmem:[#allocation5 + $0x98] sm:$0xff]   ;;  %v763_v19 = vld [vmem:[#allocation5 + $0xa0] sm:$0xff]   ;;  %v766_v22 = vld [vmem:[#allocation5 + $0xe8] sm:$0xff]  }
  0x2e   :  { %695 = vmatpush3.bf16.msra.mxu1 %v751_v7  ;;  %v767_v23 = vld [vmem:[#allocation5 + $0xa8] sm:$0xff]   ;;  %v768_v24 = vld [vmem:[#allocation5 + $0x70] sm:$0xff]   ;;  %v772_v28 = vld [vmem:[#allocation5 + $0x78] sm:$0xff]  }
  0x2f   :  { %696 = vmatprep.subr.bf16.mxu1 %v754_v10  ;;  %v769_v25 = vld [vmem:[#allocation5 + $0x30] sm:$0xff]   ;;  %v773_v29 = vld [vmem:[#allocation5 + $0x38] sm:$0xff]   ;;  %v42_v33 = vld [vmem:[#allocation2] sm:$0xff] }
  0x30   :  { %678 = vmatpush3.bf16.msra.mxu0 %v753_v9  ;;  %v770_v26 = vld [vmem:[#allocation5 + $0xf0] sm:$0xff]   ;;  %v774_v30 = vld [vmem:[#allocation5 + $0xf8] sm:$0xff]   ;;  %v776_v34 = vld [vmem:[#allocation5 + $0x140] sm:$0xff]  }
  0x31   :  { %679 = vmatprep.subr.bf16.mxu0 %v756_v12  ;;  %v771_v27 = vld [vmem:[#allocation5 + $0xb0] sm:$0xff]   ;;  %v775_v32 = vld [vmem:[#allocation5 + $0xb8] sm:$0xff]   ;;  %v45_v35 = vld [vmem:[#allocation2 + $0x18] sm:$0xff] }
  0x32   :  { %697 = vmatpush3.bf16.msra.mxu1 %v755_v11  ;;  %v43_v31 = vld [vmem:[#allocation2 + $0x8] sm:$0xff]  ;;  %v777_v36 = vld [vmem:[#allocation5 + $0x100] sm:$0xff]   ;;  %522 = vmatprep.mubr.f32.mxu1 %v45_v35  ;;  %v44_v37 = vld [vmem:[#allocation2 + $0x10] sm:$0xff] }
  0x33   :  { %698 = vmatprep.subr.bf16.mxu1 %v758_v14  ;;  %484 = vmatprep.mubr.f32.mxu0 %v43_v31  ;;  %v778_v38 = vld [vmem:[#allocation5 + $0x148] sm:$0xff]   ;;  %v780_v41 = vld [vmem:[#allocation5 + $0x150] sm:$0xff]   ;;  %v782_v43 = vld [vmem:[#allocation5 + $0x158] sm:$0xff]  }
  0x34   :  { %680 = vmatpush3.bf16.msra.mxu0 %v757_v13  ;;  %v779_v40 = vld [vmem:[#allocation5 + $0x108] sm:$0xff]   ;;  %v781_v42 = vld [vmem:[#allocation5 + $0x110] sm:$0xff]   ;;  %v783_v44 = vld [vmem:[#allocation5 + $0x118] sm:$0xff]  }
  0x35   :  { %681 = vmatprep.subr.bf16.mxu0 %v760_v16  ;;  %v784_v45 = vld [vmem:[#allocation5 + $0x160] sm:$0xff]   ;;  %v786_v47 = vld [vmem:[#allocation5 + $0x168] sm:$0xff]   ;;  %v47_v48 = vld [vmem:[#allocation2 + $0x28] sm:$0xff] }
  0x36   :  { %699 = vmatpush3.bf16.msra.mxu1 %v759_v15  ;;  %v785_v46 = vld [vmem:[#allocation5 + $0x120] sm:$0xff]   ;;  %v787_v50 = vld [vmem:[#allocation5 + $0x128] sm:$0xff]   ;;  %v48_v51 = vld [vmem:[#allocation2 + $0x30] sm:$0xff] }
  0x37   :  { %700 = vmatprep.subr.bf16.mxu1 %v762_v18  ;;  %v792_v49 = vld [vmem:[#allocation5 + $0x180] sm:$0xff]   ;;  %v788_v52 = vld [vmem:[#allocation5 + $0x170] sm:$0xff]   ;;  %v790_v54 = vld [vmem:[#allocation5 + $0x178] sm:$0xff]  }
  0x38   :  { %682 = vmatpush3.bf16.msra.mxu0 %v761_v17  ;;  %v789_v53 = vld [vmem:[#allocation5 + $0x130] sm:$0xff]   ;;  %v791_v55 = vld [vmem:[#allocation5 + $0x138] sm:$0xff]   ;;  %v46_v56 = vld [vmem:[#allocation2 + $0x20] sm:$0xff] }
  0x39   :  { %683 = vmatprep.subr.bf16.mxu0 %v764_v20  ;;  %v622_v58 = vld [vmem:[%s940_s2] ss:$0 sm:$0xff]  ;;  %s837_s2 = scalar_lea.vmem %s613_s12, 128 }
  0x3a   :  { %701 = vmatpush3.bf16.msra.mxu1 %v763_v19  ;;  %p838_p2 = scmp.ne.s32.totalorder %s613_s12, %s837_s2  ;;  %p843_p4 = scmp.lt.s32.totalorder %s837_s2, %s837_s2 }
  0x3b   :  { %702 = vmatprep.subr.bf16.mxu1 %v766_v22 }
  0x3c   :  { %684 = vmatpush3.bf16.msra.mxu0 %v765_v21  ;;  %p844_p5 = por %p843_p4, %p842_p3 }
  0x3d   :  { %685 = vmatprep.subr.bf16.mxu0 %v768_v24 }
  0x3e   :  { %703 = vmatpush3.bf16.msra.mxu1 %v767_v23  ;;  %p845_p6 = pnand %p844_p5, %p838_p2 }
  0x3f   :  { %704 = vmatprep.subr.bf16.mxu1 %v770_v26 }
  0x40   :  { %686 = vmatpush3.bf16.msra.mxu0 %v769_v25 }
  0x41   :  { %687 = vmatprep.subr.bf16.mxu0 %v772_v28 }
  0x42   :  { %705 = vmatpush3.bf16.msra.mxu1 %v771_v27 }
  0x43   :  { %706 = vmatprep.subr.bf16.mxu1 %v774_v30 }
  0x44   :  { %688 = vmatpush3.bf16.msra.mxu0 %v773_v29 }
  0x45   :  { %711 = vmatprep.subr.bf16.mxu0 %v776_v34 }
  0x46   :  { %707 = vmatpush3.bf16.msra.mxu1 %v775_v32 }
  0x47   :  { %485 = vmatmul.mubr.f32.vlgmr.msra.gmra.mrb[0].mxu0 %v42_v33  ;;  %732 = vmatprep.subr.bf16.mxu1 %v869_v39 }
  0x48   :  { %712 = vmatpush3.bf16.msra.mxu0 %v777_v36  ;;  %560 = vmatprep.mubr.f32.mxu0 %v47_v48 }
  0x49   :  { %523 = vmatmul.mubr.f32.vlgmr.msra.gmra.mrb[0].mxu1 %v44_v37  ;;  %713 = vmatprep.subr.bf16.mxu0 %v778_v38 }
  0x4a   :  { %734 = vmatprep.mubr.msk.f32.mxu1 %vm870_vm0, %v869_v39  ;;  %733 = vmatpush3.bf16.msra.mxu1 %v792_v49 }
  0x4c   :  { %714 = vmatpush3.bf16.msra.mxu0 %v779_v40 }
  0x4d   :  { %715 = vmatprep.subr.bf16.mxu0 %v780_v41  ;;  %735 = vmatmul.mubr.msk.f32.vlgmr.msra.gmra.mrb[2].mxu1 %vm448_vm1, %v48_v51 }
  0x50   :  { %716 = vmatpush3.bf16.msra.mxu0 %v781_v42 }
  0x51   :  { %717 = vmatprep.subr.bf16.mxu0 %v782_v43 }
  0x54   :  { %718 = vmatpush3.bf16.msra.mxu0 %v783_v44 }
  0x55   :  { %719 = vmatprep.subr.bf16.mxu0 %v784_v45 }
  0x58   :  { %720 = vmatpush3.bf16.msra.mxu0 %v785_v46 }
  0x59   :  { %721 = vmatprep.subr.bf16.mxu0 %v786_v47 }
  0x5c   :  { %722 = vmatpush3.bf16.msra.mxu0 %v787_v50 }
  0x5d   :  { %723 = vmatprep.subr.bf16.mxu0 %v788_v52 }
  0x60   :  { %724 = vmatpush3.bf16.msra.mxu0 %v789_v53 }
  0x61   :  { %725 = vmatprep.subr.bf16.mxu0 %v790_v54 }
  0x64   :  { %726 = vmatpush3.bf16.msra.mxu0 %v791_v55 }
  0x67   :  { %561 = vmatmul.mubr.f32.vlgmr.msra.gmra.mrb[2].mxu0 %v46_v56 }
 0x11a   :  { %v689_v57 = vpop.f32.mrb[0].mxu0 }
 0x11b   :  { %v690_v59 = vpop.f32.mrb[1].mxu0 }
 0x11c   :  { %v691_v60 = vadd.f32 %v690_v59, %v689_v57  ;;  %v708_v61 = vpop.f32.mrb[0].mxu1 }
 0x11d   :  { %v709_v63 = vpop.f32.mrb[1].mxu1 }
 0x11e   :  { %v487_v62 = vadd.f32 %v691_v60, %v622_v58  ;;  %v710_v0 = vadd.f32 %v709_v63, %v708_v61 }
 0x120   :  { %v525_v1 = vadd.f32 %v710_v0, %v487_v62  ;;  %v600_v2 = vpop.f32.mrb[2].mxu1 }
 0x121   :  { %v736_v3 = vpop.f32.mrb[3].mxu1 }
 0x13a   :  { %v727_v4 = vpop.f32.mrb[2].mxu0 }
 0x13b   :  { %v728_v5 = vpop.f32.mrb[3].mxu0 }
 0x13c   :  { %v729_v6 = vadd.f32 %v728_v5, %v727_v4 }
 0x13e   :  { %v563_v7 = vadd.f32 %v729_v6, %v525_v1 }
 0x140   :  { %v601_v8 = vadd.f32 %v600_v2, %v563_v7 }
 0x142   :  { %605 = vst.msk [vmem:[#allocation7] sm:$0xff] %vm604_vm2, %v601_v8 }
 0x143   :  { %848 = shalt.err (!%p845_p6)
}
 0x144   :  { %s849_s15 = scalar_lea.hbm %s941_s3, 128 }
 0x145   :  { %p850_p7 = scmp.ne.s32.totalorder %s941_s3, %s849_s15  ;;  %p853_p8 = scmp.lt.u32.totalorder %s849_s15, %s941_s3 }
 0x147   :  { %p855_p9 = pnand %p853_p8, %p850_p7 }
 0x149   :  { %858 = shalt.err (!%p855_p9)
}
 0x14a   :  { %615 = dma.vmem_to_hbm [thread:$0]  %s613_s12, 128, %s941_s3, [#allocation4]  }
 0x14b   :  { %863 = dma.done.wait [#allocation4], 128  }
 0x14c   :  { %864 = vsyncadd [#allocation4], 4294967168 }
 0x14d   :  { %619 = vsyncpa [#allocation3], 1 }
 0x14e   :  { %620 = vsyncpa [#allocation6], 1 }
 0x14f   :  { %621 = vsyncpa [#allocation4], 1 }

</bundles_post_ra>
